<compile_context>
chip_gen: v7x
topology: tpu7x:2x2x1
jax: 0.10.0
libtpu: 0.0.40
codegen_flags: <defaults>
</compile_context>

<pallas_src>
import functools

import jax
import jax.numpy as jnp
from jax import lax
from jax.experimental import pallas as pl
from jax.experimental.pallas import tpu as pltpu

HIDDEN = 128  # fixed by the 'CartPolePiAndV_Vector' preset


def _mhn_kernel(x_ref, w1_ref, b1_ref, wh_ref, bh_ref, out_ref, *, out_size):
    """Transposed forward: batch on the lane axis.

    x_ref  : (in_dim, TB)        input tile, batch = lanes
    w1_ref : (HIDDEN, in_dim)    trunk weight        (VMEM-resident across steps)
    b1_ref : (HIDDEN, 1)         trunk bias
    wh_ref : (HEAD_ROWS, HIDDEN) fused pi/v head weight (rows >= out_size+1 are zero)
    bh_ref : (HEAD_ROWS, 1)      fused pi/v head bias
    out_ref: (HEAD_ROWS, TB)     rows [0:out_size) = pi, row out_size = v, rest 0
    """
    # ---- common trunk: Linear -> Dropout(eval = identity) -> ReLU
    h = jnp.dot(w1_ref[...], x_ref[...], preferred_element_type=jnp.float32)
    h = jnp.maximum(h + b1_ref[...], 0.0)                           # (HIDDEN, TB)

    # ---- fused heads: one MXU pass; rows 0..out_size-1 = pi logits, row out_size = v
    z = jnp.dot(wh_ref[...], h, preferred_element_type=jnp.float32) + bh_ref[...]

    row = lax.broadcasted_iota(jnp.int32, z.shape, 0)
    is_pi = row < out_size

    # Softmax over the pi rows only (sublane-axis reduce -> XLU slot, exp -> EUP slot).
    logits = jnp.where(is_pi, z, jnp.float32(-1e30))                # mask v / pad rows
    m = jnp.max(logits, axis=0, keepdims=True)                      # (1, TB)
    e = jnp.exp(logits - m)                                         # masked rows -> 0 exactly
    denom = jnp.sum(e, axis=0, keepdims=True)                       # (1, TB)
    pi = e * pl.reciprocal(denom, approx=False)                     # exact; off critical path

    # Compact output: pi rows, v row (raw z), zero padding rows (pi == 0 there already).
    out_ref[...] = jnp.where(row == out_size, z, pi).astype(out_ref.dtype)


def _pick_batch_block(B, target=2048):
    if B <= 256:
        return B                               # single step; step overhead dominates anyway
    blk = (B // 2) // 128 * 128                # >=2 steps so v7x megacore can split the batch
    return max(128, min(target, blk))


def multi_headed_network(x, kparams, *, block_b=None):
    """x: (B, in_dim) float32; kparams: output of prepare_params().

    Returns (pi, v) with pi: (B, out_size), v: (B, 1)."""
    B, in_dim = x.shape
    out_size = kparams["out_size"]
    w1_t, b1_t = kparams["w1_t"], kparams["b1_t"]
    wh_t, bh_t = kparams["wh_t"], kparams["bh_t"]
    head_rows = wh_t.shape[0]
    assert w1_t.shape == (HIDDEN, in_dim)

    if block_b is None:
        block_b = _pick_batch_block(B)
    # Boundary block (if B % block_b != 0) is implicitly padded; all math in the
    # kernel is column-independent, so padded columns never affect real outputs.
    grid = (pl.cdiv(B, block_b),)

    x_t = x.T  # (in_dim, B): batch on the lane axis -> lane-dense loads (16 B/row total)

    kernel = functools.partial(_mhn_kernel, out_size=out_size)

    # Weights/biases: constant block index -> stay VMEM-resident across grid steps.
    const = lambda a: pl.BlockSpec(a.shape, lambda i: (0,) * a.ndim)

    out_t = pl.pallas_call(
        kernel,
        out_shape=jax.ShapeDtypeStruct((head_rows, B), jnp.float32),
        grid=grid,
        in_specs=[
            pl.BlockSpec((in_dim, block_b), lambda i: (0, i)),
            const(w1_t), const(b1_t), const(wh_t), const(bh_t),
        ],
        out_specs=pl.BlockSpec((head_rows, block_b), lambda i: (0, i)),
        compiler_params=pltpu.CompilerParams(
            dimension_semantics=("parallel",)),
    )(x_t, w1_t, b1_t, wh_t, bh_t)

    # Contiguous row slices (cheap) back to the PyTorch-facing (B, ...) layout.
    pi = out_t[:out_size, :].T                  # (B, out_size)
    v = out_t[out_size:out_size + 1, :].T       # (B, 1)
    return pi, v


def init_params(key, in_dim, hidden, out_size):
    """Deterministic init mimicking nn.Linear's U(-1/sqrt(fan_in), 1/sqrt(fan_in)).

    Weights are stored transposed vs. PyTorch: (in_features, out_features)."""
    ks = jax.random.split(key, 6)

    def lin(kw, kb, fan_in, fan_out):
        bound = 1.0 / jnp.sqrt(jnp.float32(fan_in))
        w = jax.random.uniform(kw, (fan_in, fan_out), jnp.float32, -bound, bound)
        b = jax.random.uniform(kb, (1, fan_out), jnp.float32, -bound, bound)
        return w, b

    w1, b1 = lin(ks[0], ks[1], in_dim, hidden)
    w_pi, b_pi = lin(ks[2], ks[3], hidden, out_size)
    w_v, b_v = lin(ks[4], ks[5], hidden, 1)
    return {"w1": w1, "b1": b1, "w_pi": w_pi, "b_pi": b_pi, "w_v": w_v, "b_v": b_v}


def prepare_params(params):
    """One-time conversion to the kernel layout (hoisted OFF the per-call path).

    Builds the transposed trunk weight and the fused, sublane-padded head slab:
      wh_t rows [0:out_size) = W_pi^T, row out_size = W_v^T, remaining rows zero."""
    in_dim, hidden = params["w1"].shape
    out_size = params["w_pi"].shape[1]
    head_rows = ((out_size + 1 + 7) // 8) * 8      # sublane-pad to a multiple of 8

    w1_t = jnp.asarray(params["w1"].T, jnp.float32)                 # (hidden, in_dim)
    b1_t = jnp.asarray(params["b1"].reshape(hidden, 1), jnp.float32)

    wh_t = jnp.zeros((head_rows, hidden), jnp.float32)
    wh_t = wh_t.at[:out_size, :].set(params["w_pi"].T)
    wh_t = wh_t.at[out_size, :].set(params["w_v"][:, 0])
    bh_t = jnp.zeros((head_rows, 1), jnp.float32)
    bh_t = bh_t.at[:out_size, 0].set(params["b_pi"][0, :])
    bh_t = bh_t.at[out_size, 0].set(params["b_v"][0, 0])

    return {"w1_t": w1_t, "b1_t": b1_t, "wh_t": wh_t, "bh_t": bh_t,
            "out_size": out_size}


def reference(x, params):
    """Pure-JAX reference of the PyTorch forward (eval mode)."""
    h = jnp.maximum(x @ params["w1"] + params["b1"], 0.0)
    logits = h @ params["w_pi"] + params["b_pi"]
    pi = jax.nn.softmax(logits, axis=1)
    v = h @ params["w_v"] + params["b_v"]
    return pi, v


if __name__ == "__main__":
    key = jax.random.PRNGKey(0)
    k_x, k_p = jax.random.split(key)

    # CartPole-like: input_shape=(4,), output_size=2 actions, hidden=128 (preset).
    batch, in_dim, hidden, out_size = 8, 4, 128, 2

    x = jax.random.normal(k_x, (batch, in_dim), jnp.float32)
    params = init_params(k_p, in_dim, hidden, out_size)
    kparams = prepare_params(params)       # one-time setup; NOT on the per-call path

    pi, v = multi_headed_network(x, kparams)
    jax.block_until_ready((pi, v))

    pi_ref, v_ref = reference(x, params)
    assert pi.shape == (batch, out_size) and v.shape == (batch, 1)
    assert jnp.allclose(pi, pi_ref, atol=2e-3, rtol=2e-3)
    assert jnp.allclose(v, v_ref, atol=2e-3, rtol=2e-3)
    # Exact reciprocal -> softmax rows sum to 1 to f32 precision.
    assert jnp.allclose(jnp.sum(pi, axis=1), 1.0, atol=1e-5)

    print("KERNEL_OK")
</pallas_src>

<mosaic_0001>
module attributes {stable_mosaic.version = 11 : i64} {
  func.func @_mhn_kernel(%arg0: i32, %arg1: memref<4x8xf32, #tpu.memory_space<vmem>>, %arg2: memref<128x4xf32, #tpu.memory_space<vmem>>, %arg3: memref<128x1xf32, #tpu.memory_space<vmem>>, %arg4: memref<8x128xf32, #tpu.memory_space<vmem>>, %arg5: memref<8x1xf32, #tpu.memory_space<vmem>>, %arg6: memref<8x8xf32, #tpu.memory_space<vmem>>) attributes {dimension_semantics = [#tpu.dimension_semantics<parallel>], iteration_bounds = array<i64: 1>, scalar_prefetch = 0 : i64, scratch_operands = 0 : i64, tpu.core_type = #tpu.core_type<tc>, window_params = [{transform_indices = @transform_0, window_bounds = array<i64: 4, 8>}, {pipeline_mode = #tpu.pipeline_mode<synchronous>, transform_indices = @transform_1, window_bounds = array<i64: 128, 4>}, {pipeline_mode = #tpu.pipeline_mode<synchronous>, transform_indices = @transform_2, window_bounds = array<i64: 128, 1>}, {pipeline_mode = #tpu.pipeline_mode<synchronous>, transform_indices = @transform_3, window_bounds = array<i64: 8, 128>}, {pipeline_mode = #tpu.pipeline_mode<synchronous>, transform_indices = @transform_4, window_bounds = array<i64: 8, 1>}, {transform_indices = @transform_5, window_bounds = array<i64: 8, 8>}]} {
    %c0 = arith.constant 0 : index
    %c0_0 = arith.constant 0 : index
    %0 = vector.load %arg2[%c0, %c0_0] : memref<128x4xf32, #tpu.memory_space<vmem>>, vector<128x4xf32>
    %c0_1 = arith.constant 0 : index
    %c0_2 = arith.constant 0 : index
    %1 = vector.load %arg1[%c0_1, %c0_2] : memref<4x8xf32, #tpu.memory_space<vmem>>, vector<4x8xf32>
    %cst = arith.constant dense<0.000000e+00> : vector<128x8xf32>
    %2 = tpu.matmul %0, %1, %cst {dimension_numbers = #tpu.dot_dimension_numbers<[1], [0], [0], [1], [0, 0, 1, 1], [], []>} : vector<128x4xf32>, vector<4x8xf32>, vector<128x8xf32> -> vector<128x8xf32>
    %c0_3 = arith.constant 0 : index
    %c0_4 = arith.constant 0 : index
    %3 = vector.load %arg3[%c0_3, %c0_4] : memref<128x1xf32, #tpu.memory_space<vmem>>, vector<128x1xf32>
    %4 = vector.broadcast %3 : vector<128x1xf32> to vector<128x8xf32>
    %5 = arith.addf %2, %4 : vector<128x8xf32>
    %cst_5 = arith.constant 0.000000e+00 : f32
    %6 = vector.broadcast %cst_5 : f32 to vector<128x8xf32>
    %7 = arith.maximumf %5, %6 : vector<128x8xf32>
    %c0_6 = arith.constant 0 : index
    %c0_7 = arith.constant 0 : index
    %8 = vector.load %arg4[%c0_6, %c0_7] : memref<8x128xf32, #tpu.memory_space<vmem>>, vector<8x128xf32>
    %cst_8 = arith.constant dense<0.000000e+00> : vector<8x8xf32>
    %9 = tpu.matmul %8, %7, %cst_8 {dimension_numbers = #tpu.dot_dimension_numbers<[1], [0], [0], [1], [0, 0, 1, 1], [], []>} : vector<8x128xf32>, vector<128x8xf32>, vector<8x8xf32> -> vector<8x8xf32>
    %c0_9 = arith.constant 0 : index
    %c0_10 = arith.constant 0 : index
    %10 = vector.load %arg5[%c0_9, %c0_10] : memref<8x1xf32, #tpu.memory_space<vmem>>, vector<8x1xf32>
    %11 = vector.broadcast %10 : vector<8x1xf32> to vector<8x8xf32>
    %12 = arith.addf %9, %11 : vector<8x8xf32>
    %13 = tpu.iota {dimensions = array<i32: 0>} : vector<8x8xi32>
    %c2_i32 = arith.constant 2 : i32
    %14 = vector.broadcast %c2_i32 : i32 to vector<8x8xi32>
    %15 = arith.cmpi slt, %13, %14 : vector<8x8xi32>
    %cst_11 = arith.constant -1.000000e+30 : f32
    %16 = vector.broadcast %cst_11 : f32 to vector<8x8xf32>
    %17 = arith.select %15, %12, %16 : vector<8x8xi1>, vector<8x8xf32>
    %cst_12 = arith.constant dense<0xFF800000> : vector<8xf32>
    %18 = vector.multi_reduction <maximumf>, %17, %cst_12 [0] : vector<8x8xf32> to vector<8xf32>
    %19 = vector.shape_cast %18 : vector<8xf32> to vector<1x8xf32>
    %20 = vector.broadcast %19 : vector<1x8xf32> to vector<8x8xf32>
    %21 = arith.subf %17, %20 : vector<8x8xf32>
    %22 = math.exp %21 : vector<8x8xf32>
    %cst_13 = arith.constant dense<0.000000e+00> : vector<8xf32>
    %23 = vector.multi_reduction <add>, %22, %cst_13 [0] : vector<8x8xf32> to vector<8xf32>
    %24 = vector.shape_cast %23 : vector<8xf32> to vector<1x8xf32>
    %25 = tpu.reciprocal %24 : vector<1x8xf32> -> vector<1x8xf32>
    %26 = vector.broadcast %25 : vector<1x8xf32> to vector<8x8xf32>
    %27 = arith.mulf %22, %26 : vector<8x8xf32>
    %c2_i32_14 = arith.constant 2 : i32
    %28 = vector.broadcast %c2_i32_14 : i32 to vector<8x8xi32>
    %29 = arith.cmpi eq, %13, %28 : vector<8x8xi32>
    %30 = arith.select %29, %12, %27 : vector<8x8xi1>, vector<8x8xf32>
    %c0_15 = arith.constant 0 : index
    %c0_16 = arith.constant 0 : index
    %31 = vector.load %arg6[%c0_15, %c0_16] : memref<8x8xf32, #tpu.memory_space<vmem>>, vector<8x8xf32>
    tpu.vector_store %arg6[%c0_15, %c0_16], %30 {strides = array<i32>} : memref<8x8xf32, #tpu.memory_space<vmem>>, vector<8x8xf32>,
    return
  }
  func.func @transform_0(%arg0: i32) -> (i32, i32) {
    %c0_i32 = arith.constant 0 : i32
    %c0_i32_0 = arith.constant 0 : i32
    return %c0_i32, %arg0 : i32, i32
  }
  func.func @transform_1(%arg0: i32) -> (i32, i32) {
    %c0_i32 = arith.constant 0 : i32
    %c0_i32_0 = arith.constant 0 : i32
    %c0_i32_1 = arith.constant 0 : i32
    return %c0_i32, %c0_i32_0 : i32, i32
  }
  func.func @transform_2(%arg0: i32) -> (i32, i32) {
    %c0_i32 = arith.constant 0 : i32
    %c0_i32_0 = arith.constant 0 : i32
    %c0_i32_1 = arith.constant 0 : i32
    return %c0_i32, %c0_i32_0 : i32, i32
  }
  func.func @transform_3(%arg0: i32) -> (i32, i32) {
    %c0_i32 = arith.constant 0 : i32
    %c0_i32_0 = arith.constant 0 : i32
    %c0_i32_1 = arith.constant 0 : i32
    return %c0_i32, %c0_i32_0 : i32, i32
  }
  func.func @transform_4(%arg0: i32) -> (i32, i32) {
    %c0_i32 = arith.constant 0 : i32
    %c0_i32_0 = arith.constant 0 : i32
    %c0_i32_1 = arith.constant 0 : i32
    return %c0_i32, %c0_i32_0 : i32, i32
  }
  func.func @transform_5(%arg0: i32) -> (i32, i32) {
    %c0_i32 = arith.constant 0 : i32
    %c0_i32_0 = arith.constant 0 : i32
    return %c0_i32, %arg0 : i32, i32
  }
}

</mosaic_0001>

<bundles_post_ra>
// kernel: tpu_custom_call.1
= control target key start
LH: loop header
LB: loop body
LE: loop exit
PB: predicated region body
PF: predicated region fallthrough
CT: control target
= control target key end

     0   :  { %vm183_vm0 = vcmask 1043456   ;;  %vm134_vm1 = vcmask 31744   ;;  %v637_v4 = vmov 0   ;;  %s816_s0 = inlined_call_operand.vmem [shape: f32[4,8], index: 0, kind: input, shape index: {}]   ;;  %s817_s1 = inlined_call_operand.vmem [shape: f32[128,4], index: 1, kind: input, shape index: {}]   ;;  %s818_s2 = inlined_call_operand.vmem [shape: f32[128,1], index: 2, kind: input, shape index: {}]   ;;  %s819_s3 = inlined_call_operand.vmem [shape: f32[8,128], index: 3, kind: input, shape index: {}]   ;;  %s820_s4 = inlined_call_operand.vmem [shape: f32[8,1], index: 4, kind: input, shape index: {}]   ;;  %s821_s5 = inlined_call_operand.hbm [shape: f32[8,8], index: 5, kind: output, shape index: {}]  }
   0x1   :  { %v37_v0 = vld [vmem:[%s816_s0] sm:$0xf]  ;;  %v22_v2 = vld [vmem:[%s817_s1 + $0x8] sm:$0xff]  ;;  %v23_v3 = vld [vmem:[%s817_s1 + $0x10] sm:$0xff]  ;;  %607 = vset.pattern.permute.xlu0 %v637_v4  ;;  %608 = vset.pattern.permute.xlu1 %v637_v4 }
   0x2   :  { %v21_v1 = vld [vmem:[%s817_s1] sm:$0xff]  ;;  %517 = vmatprep.subr.msk.mxu0 %vm183_vm0, %v37_v0  ;;  %v24_v5 = vld [vmem:[%s817_s1 + $0x18] sm:$0xff]  ;;  %v40_v8 = vld [vmem:[%s818_s2 + $0x10] sm:$0xff] }
   0x3   :  { %519 = vmatprep.mubr.msk.f32.mxu0 %vm134_vm1, %v21_v1  ;;  %518 = vmatpush3.msk.msra.mxu0 %vm183_vm0, %v37_v0  ;;  %v25_v6 = vld [vmem:[%s817_s1 + $0x20] sm:$0xff]  ;;  %v39_v9 = vld [vmem:[%s818_s2 + $0x8] sm:$0xff]  ;;  %v41_v11 = vld [vmem:[%s818_s2 + $0x18] sm:$0xff] }
   0x4   :  { %520 = vmatmul.mubr.msk.f32.vlgmr.msra.gmra.mrb[0].mxu0 %vm134_vm1, %v22_v2  ;;  %v38_v7 = vld [vmem:[%s818_s2] sm:$0xff]  ;;  %66 = vperm.xlu1 %608, %v40_v8   ;;  %v26_v10 = vld [vmem:[%s817_s1 + $0x28] sm:$0xff]  ;;  %v27_v12 = vld [vmem:[%s817_s1 + $0x30] sm:$0xff] }
   0x5   :  { %522 = vmatprep.mubr.msk.f32.mxu0 %vm134_vm1, %v23_v3  ;;  %56 = vperm.xlu0 %607, %v38_v7   ;;  %v42_v13 = vld [vmem:[%s818_s2 + $0x20] sm:$0xff] }
   0x8   :  { %523 = vmatmul.mubr.msk.f32.gmra.mrb[2].mxu0 %vm134_vm1, %v24_v5  ;;  %71 = vperm.xlu1 %608, %v41_v11  }
   0x9   :  { %525 = vmatprep.mubr.msk.f32.mxu0 %vm134_vm1, %v25_v6  ;;  %61 = vperm.xlu0 %607, %v39_v9  }
   0xc   :  { %526 = vmatmul.mubr.msk.f32.gmra.mrb[4].mxu0 %vm134_vm1, %v26_v10 }
   0xd   :  { %10 = vsyncpa [#allocation3], 0  ;;  %528 = vmatprep.mubr.msk.f32.mxu0 %vm134_vm1, %v27_v12  ;;  %v28_v14 = vld [vmem:[%s817_s1 + $0x38] sm:$0xff]  ;;  %v43_v15 = vld [vmem:[%s818_s2 + $0x28] sm:$0xff]  ;;  %76 = vperm.xlu0 %607, %v42_v13   ;;  %v638_v35 = vmov 0.0|0.0   ;;  %vm639_vm2 = vmmov 0  }
   0xe   :  { %v29_v16 = vld [vmem:[%s817_s1 + $0x40] sm:$0xff]  ;;  %v44_v17 = vld [vmem:[%s818_s2 + $0x30] sm:$0xff]  ;;  %81 = vperm.xlu1 %608, %v43_v15   ;;  %v30_v18 = vld [vmem:[%s817_s1 + $0x48] sm:$0xff]  ;;  %578 = vmatprep.subr.bf16.mxu1 %v638_v35  ;;  %v640_v36 = vmov 0.0   ;;  %vm429_vm4 = vcmask 64512  }
   0xf   :  { %v45_v19 = vld [vmem:[%s818_s2 + $0x38] sm:$0xff]  ;;  %v31_v20 = vld [vmem:[%s817_s1 + $0x50] sm:$0xff]  ;;  %v46_v21 = vld [vmem:[%s818_s2 + $0x40] sm:$0xff]  ;;  %575 = vmatprep.mubr.msk.f32.mxu1 %vm639_vm2, %v640_v36 }
  0x10   :  { %529 = vmatmul.mubr.msk.f32.gmra.mrb[6].mxu0 %vm134_vm1, %v28_v14  ;;  %v32_v22 = vld [vmem:[%s817_s1 + $0x58] sm:$0xff]  ;;  %v47_v23 = vld [vmem:[%s818_s2 + $0x48] sm:$0xff]  ;;  %v33_v24 = vld [vmem:[%s817_s1 + $0x60] sm:$0xff] }
  0x11   :  { %531 = vmatprep.mubr.msk.f32.mxu0 %vm134_vm1, %v29_v16  ;;  %86 = vperm.xlu0 %607, %v44_v17   ;;  %v48_v25 = vld [vmem:[%s818_s2 + $0x50] sm:$0xff]  ;;  %v34_v26 = vld [vmem:[%s817_s1 + $0x68] sm:$0xff]  ;;  %v49_v27 = vld [vmem:[%s818_s2 + $0x58] sm:$0xff] }
  0x12   :  { %91 = vperm.xlu1 %608, %v45_v19   ;;  %v35_v28 = vld [vmem:[%s817_s1 + $0x70] sm:$0xff]  ;;  %v50_v29 = vld [vmem:[%s818_s2 + $0x60] sm:$0xff]  ;;  %v36_v30 = vld [vmem:[%s817_s1 + $0x78] sm:$0xff] }
  0x13   :  { %v51_v31 = vld [vmem:[%s818_s2 + $0x68] sm:$0xff]  ;;  %v52_v32 = vld [vmem:[%s818_s2 + $0x70] sm:$0xff]  ;;  %v53_v33 = vld [vmem:[%s818_s2 + $0x78] sm:$0xff] }
  0x14   :  { %532 = vmatmul.mubr.msk.f32.gmra.mrb[8].mxu0 %vm134_vm1, %v30_v18  ;;  %v349_v34 = vld [vmem:[%s820_s4] sm:$0xff] }
  0x15   :  { %534 = vmatprep.mubr.msk.f32.mxu0 %vm134_vm1, %v31_v20  ;;  %96 = vperm.xlu0 %607, %v46_v21  }
  0x16   :  { %101 = vperm.xlu1 %608, %v47_v23  }
  0x18   :  { %535 = vmatmul.mubr.msk.f32.gmra.mrb[10].mxu0 %vm134_vm1, %v32_v22 }
  0x19   :  { %537 = vmatprep.mubr.msk.f32.mxu0 %vm134_vm1, %v33_v24  ;;  %106 = vperm.xlu0 %607, %v48_v25  }
  0x1a   :  { %111 = vperm.xlu1 %608, %v49_v27  }
  0x1c   :  { %538 = vmatmul.mubr.msk.f32.gmra.mrb[12].mxu0 %vm134_vm1, %v34_v26 }
  0x1d   :  { %540 = vmatprep.mubr.msk.f32.mxu0 %vm134_vm1, %v35_v28  ;;  %116 = vperm.xlu0 %607, %v50_v29  }
  0x1e   :  { %121 = vperm.xlu1 %608, %v51_v31  }
  0x20   :  { %541 = vmatmul.mubr.msk.f32.gmra.mrb[14].mxu0 %vm134_vm1, %v36_v30 }
  0x21   :  { %126 = vperm.xlu0 %607, %v52_v32  }
  0x22   :  { %131 = vperm.xlu1 %608, %v53_v33  }
  0x25   :  { %352 = vperm.xlu0 %607, %v349_v34  }
  0x83   :  { %v67_v37 = vpop.permute.xlu1 %66 }
  0x84   :  { %v57_v38 = vpop.permute.xlu0 %56 }
  0x87   :  { %v72_v39 = vpop.permute.xlu1 %71 }
  0x88   :  { %v62_v40 = vpop.permute.xlu0 %61 }
  0x8c   :  { %v77_v42 = vpop.permute.xlu0 %76 }
  0x8d   :  { %v82_v41 = vpop.permute.xlu1 %81 }
  0x90   :  { %v87_v51 = vpop.permute.xlu0 %86 }
  0x91   :  { %v92_v48 = vpop.permute.xlu1 %91 }
  0x94   :  { %v97_v0 = vpop.permute.xlu0 %96 }
  0x95   :  { %v102_v61 = vpop.permute.xlu1 %101 }
  0x98   :  { %v107_v12 = vpop.permute.xlu0 %106 }
  0x99   :  { %v112_v9 = vpop.permute.xlu1 %111 }
  0x9c   :  { %v117_v25 = vpop.permute.xlu0 %116 }
  0x9d   :  { %v122_v22 = vpop.permute.xlu1 %121 }
  0xa1   :  { %v132_v34 = vpop.permute.xlu1 %131 }
  0xd7   :  { %v521_v43 = vpop.f32.mrb[0].mxu0 }
  0xd8   :  { %v259_v44 = vadd.f32 %v521_v43, %v62_v40  ;;  %v253_v45 = vpop.f32.mrb[1].mxu0 }
  0xd9   :  { %v254_v46 = vadd.f32 %v253_v45, %v57_v38  ;;  %v127_v38 = vpop.permute.xlu0 %126 }
  0xda   :  { %v333_v47 = vmax.f32 %v259_v44, 0.0 }
  0xdb   :  { %v332_v49 = vmax.f32 %v254_v46, 0.0  ;;  %v524_v50 = vpop.f32.mrb[2].mxu0  ;;  %v348_v46 = vld [vmem:[%s819_s3] sm:$0xff]  ;;  %s641_s3 = smov [#allocation2]  }
  0xdc   :  { %v269_v52 = vadd.f32 %v524_v50, %v72_v39  ;;  %v263_v53 = vpop.f32.mrb[3].mxu0  ;;  %s458_s4 = sshll.u32 %s641_s3, 4  ;;  %s459_s4 = int_to_ptr.vmem [resolvable:$true] %s458_s4 }
  0xdd   :  { %v264_v54 = vadd.f32 %v263_v53, %v67_v37  ;;  %v579_v55 = vpack.c.bf16 %v333_v47, %v332_v49  ;;  %v425_v47 = vlaneseq  ;;  %v353_v49 = vpop.permute.xlu0 %352  ;;  %s613_s8 = scalar_lea.vmem %s459_s4, 128  ;;  %p618_p1 = scmp.lt.s32.totalorder %s459_s4, %s459_s4 }
  0xde   :  { %v335_v56 = vmax.f32 %v269_v52, 0.0  ;;  %p614_p0 = scmp.ne.s32.totalorder %s459_s4, %s613_s8  ;;  %p619_p2 = scmp.lt.s32.totalorder %s613_s8, %s613_s8 }
  0xdf   :  { %v334_v57 = vmax.f32 %v264_v54, 0.0  ;;  %v527_v58 = vpop.f32.mrb[4].mxu0  ;;  %580 = vmatpush3.bf16.msra.mxu1 %v579_v55 }
  0xe0   :  { %v279_v59 = vadd.f32 %v527_v58, %v82_v41  ;;  %v273_v60 = vpop.f32.mrb[5].mxu0  ;;  %581 = vmatprep.subr.bf16.mxu1 %v638_v35  ;;  %p620_p3 = por %p619_p2, %p618_p1 }
  0xe1   :  { %v582_v62 = vpack.c.bf16 %v335_v56, %v334_v57  ;;  %v274_v63 = vadd.f32 %v273_v60, %v77_v42 }
  0xe2   :  { %v337_v1 = vmax.f32 %v279_v59, 0.0  ;;  %p621_p4 = pnand %p620_p3, %p614_p0 }
  0xe3   :  { %v336_v2 = vmax.f32 %v274_v63, 0.0  ;;  %v530_v3 = vpop.f32.mrb[6].mxu0  ;;  %583 = vmatpush3.bf16.msra.mxu1 %v582_v62 }
  0xe4   :  { %v289_v4 = vadd.f32 %v530_v3, %v92_v48  ;;  %v283_v5 = vpop.f32.mrb[7].mxu0  ;;  %584 = vmatprep.subr.bf16.mxu1 %v638_v35  ;;  %v426_v48 = vshrl.u32 %v425_v47, 7 }
  0xe5   :  { %v585_v6 = vpack.c.bf16 %v337_v1, %v336_v2  ;;  %v284_v7 = vadd.f32 %v283_v5, %v87_v51 }
  0xe6   :  { %v339_v8 = vmax.f32 %v289_v4, 0.0  ;;  %vm427_vm3 = vcmp.lt.s32.totalorder %v426_v48, 2  ;;  %vm449_vm5 = vcmp.eq.s32.totalorder %v426_v48, 2 }
  0xe7   :  { %v338_v10 = vmax.f32 %v284_v7, 0.0  ;;  %v533_v11 = vpop.f32.mrb[8].mxu0  ;;  %586 = vmatpush3.bf16.msra.mxu1 %v585_v6 }
  0xe8   :  { %v299_v13 = vadd.f32 %v533_v11, %v102_v61  ;;  %v293_v14 = vpop.f32.mrb[9].mxu0  ;;  %587 = vmatprep.subr.bf16.mxu1 %v638_v35 }
  0xe9   :  { %v588_v15 = vpack.c.bf16 %v339_v8, %v338_v10  ;;  %v294_v16 = vadd.f32 %v293_v14, %v97_v0 }
  0xea   :  { %v341_v17 = vmax.f32 %v299_v13, 0.0 }
  0xeb   :  { %v340_v18 = vmax.f32 %v294_v16, 0.0  ;;  %v536_v19 = vpop.f32.mrb[10].mxu0  ;;  %589 = vmatpush3.bf16.msra.mxu1 %v588_v15 }
  0xec   :  { %v309_v20 = vadd.f32 %v536_v19, %v112_v9  ;;  %v303_v21 = vpop.f32.mrb[11].mxu0  ;;  %590 = vmatprep.subr.bf16.mxu1 %v638_v35 }
  0xed   :  { %v591_v23 = vpack.c.bf16 %v341_v17, %v340_v18  ;;  %v304_v24 = vadd.f32 %v303_v21, %v107_v12 }
  0xee   :  { %v343_v26 = vmax.f32 %v309_v20, 0.0 }
  0xef   :  { %v342_v27 = vmax.f32 %v304_v24, 0.0  ;;  %v539_v28 = vpop.f32.mrb[12].mxu0  ;;  %592 = vmatpush3.bf16.msra.mxu1 %v591_v23 }
  0xf0   :  { %v319_v29 = vadd.f32 %v539_v28, %v122_v22  ;;  %v313_v30 = vpop.f32.mrb[13].mxu0  ;;  %593 = vmatprep.subr.bf16.mxu1 %v638_v35 }
  0xf1   :  { %v594_v31 = vpack.c.bf16 %v343_v26, %v342_v27  ;;  %v314_v32 = vadd.f32 %v313_v30, %v117_v25 }
  0xf2   :  { %v345_v33 = vmax.f32 %v319_v29, 0.0 }
  0xf3   :  { %v344_v36 = vmax.f32 %v314_v32, 0.0  ;;  %v542_v37 = vpop.f32.mrb[14].mxu0  ;;  %595 = vmatpush3.bf16.msra.mxu1 %v594_v31 }
  0xf4   :  { %v329_v39 = vadd.f32 %v542_v37, %v132_v34  ;;  %v323_v40 = vpop.f32.mrb[15].mxu0  ;;  %596 = vmatprep.subr.bf16.mxu1 %v638_v35 }
  0xf5   :  { %v597_v41 = vpack.c.bf16 %v345_v33, %v344_v36  ;;  %v324_v42 = vadd.f32 %v323_v40, %v127_v38 }
  0xf6   :  { %v347_v43 = vmax.f32 %v329_v39, 0.0 }
  0xf7   :  { %v346_v44 = vmax.f32 %v324_v42, 0.0  ;;  %598 = vmatpush3.bf16.msra.mxu1 %v597_v41 }
  0xf8   :  { %599 = vmatprep.subr.bf16.mxu1 %v638_v35 }
  0xf9   :  { %v600_v45 = vpack.c.bf16 %v347_v43, %v346_v44 }
  0xfb   :  { %601 = vmatpush3.bf16.msra.mxu1 %v600_v45 }
  0xfe   :  { %576 = vmatmul.mubr.f32.vlgmr.msra.gmra.mrb[0].mxu1 %v348_v46 }
 0x1d1   :  { %v421_v50 = vpop.f32.mrb[0].mxu1 }
 0x1d2   :  { %v422_v51 = vadd.f32 %v421_v50, %v353_v49  ;;  %v577_v52 = vpop.f32.mrb[1].mxu1 }
 0x1d4   :  { %v428_v53 = vsel %vm427_vm3, %v422_v51, -1e+30 }
 0x1d5   :  { %v430_v54 = vsel %vm429_vm4, %v428_v53, -inf }
 0x1d6   :  { %v431_v55 = vrot.slane %v430_v54, 4 }
 0x1d8   :  { %v432_v35 = vmax.f32 %v430_v54, %v431_v55 }
 0x1da   :  { %v433_v56 = vrot.slane %v432_v35, 2 }
 0x1dc   :  { %v434_v57 = vmax.f32 %v432_v35, %v433_v56 }
 0x1de   :  { %v435_v58 = vrot.slane %v434_v57, 1 }
 0x1e0   :  { %v436_v59 = vmax.f32 %v434_v57, %v435_v58 }
 0x1e2   :  { %v437_v60 = vsub.f32 %v428_v53, %v436_v59 }
 0x1e4   :  { %v438_v61 = vmul.f32 1.442695, %v437_v60 }
 0x1e6   :  { %609 = vpow2.f32 %v438_v61 }
 0x1f0   :  { %v610_v62 = vpop.eup %609 }
 0x1f1   :  { %v440_v63 = vsel %vm429_vm4, %v610_v62, 0.0 }
 0x1f2   :  { %v441_v0 = vrot.slane %v440_v63, 4 }
 0x1f4   :  { %v442_v1 = vadd.f32 %v441_v0, %v440_v63 }
 0x1f6   :  { %v443_v2 = vrot.slane %v442_v1, 2 }
 0x1f8   :  { %v444_v3 = vadd.f32 %v443_v2, %v442_v1 }
 0x1fa   :  { %v445_v4 = vrot.slane %v444_v3, 1 }
 0x1fc   :  { %v446_v5 = vadd.f32 %v445_v4, %v444_v3 }
 0x1fe   :  { %611 = vrcp.f32 %v446_v5 }
 0x208   :  { %v612_v6 = vpop.eup %611 }
 0x209   :  { %v448_v7 = vmul.f32 %v612_v6, %v610_v62 }
 0x20b   :  { %v450_v8 = vsel %vm449_vm5, %v422_v51, %v448_v7 }
 0x20c   :  { %451 = vst.msk [vmem:[#allocation2] sm:$0xff] %vm429_vm4, %v450_v8 }
 0x20d   :  { %624 = shalt.err (!%p621_p4)
}
 0x20e   :  { %s625_s11 = scalar_lea.hbm %s821_s5, 128 }
 0x20f   :  { %p626_p5 = scmp.ne.s32.totalorder %s821_s5, %s625_s11  ;;  %p629_p6 = scmp.lt.u32.totalorder %s625_s11, %s821_s5 }
 0x211   :  { %p631_p7 = pnand %p629_p6, %p626_p5 }
 0x213   :  { %634 = shalt.err (!%p631_p7)
}
 0x214   :  { %461 = dma.vmem_to_hbm [thread:$0]  %s459_s4, 128, %s821_s5, [#allocation3]  }
 0x215   :  { %635 = dma.done.wait [#allocation3], 128  }
 0x216   :  { %636 = vsyncadd [#allocation3], 4294967168 }
 0x217   :  { %465 = vsyncpa [#allocation3], 1 }

</bundles_post_ra>
